<compile_context>
chip_gen: v7x
topology: tpu7x:2x2x1
jax: 0.10.0
libtpu: 0.0.40
codegen_flags: <defaults>
</compile_context>

<pallas_src>
import math

import jax
import jax.numpy as jnp
from jax import lax
from jax.experimental import pallas as pl
from jax.experimental.pallas import tpu as pltpu

# ---------------------------------------------------------------------------
# Config (small, consistent with the module's forward)
# ---------------------------------------------------------------------------
B, C_IN, H, W = 2, 4, 16, 16      # input images (NCHW)
HW = H * W
C_FEAT = 32                       # backbone output channels (in_features)
EMB = 32                          # embedding_size
NUM_CLASSES = 16                  # num_classes
S = 30.0                          # ArcMargin scale s
M = 0.50                          # ArcMargin margin m
EASY_MARGIN = False
LS_EPS = 0.1                      # label smoothing eps
GEM_P = 3.0                       # GeM p (Parameter init value in ex.GeM)
GEM_EPS = 1e-6                    # GeM clamp eps

_COS_M = math.cos(M)
_SIN_M = math.sin(M)
_TH = math.cos(math.pi - M)
_MM = math.sin(math.pi - M) * M

# ---------------------------------------------------------------------------
# Merged parameter slab layout (f32, 128 lanes wide, 8-aligned row offsets)
# ---------------------------------------------------------------------------
LANES = 128
ROW_STEM = 0                      # rows  0..31 : w_stem  (C_FEAT, C_IN)
ROW_EMB = 32                      # rows 32..63 : w_emb   (EMB, C_FEAT)
ROW_BEMB = 64                     # rows 64..95 : b_emb   (EMB, 1) column
ROW_ARC = 96                      # rows 96..111: w_arc_n (NUM_CLASSES, EMB)
ROW_LBL = 112                     # row  112    : labels as exact-integer f32 (1, B)
SLAB_ROWS = 120                   # padded to a multiple of 8


# ---------------------------------------------------------------------------
# Kernel: backbone-stem -> GeM -> Linear embedding -> ArcMarginProduct
# Two inputs only: lane-dense activations + the merged parameter slab.
# ---------------------------------------------------------------------------
def _happywhale_kernel(x_ref,       # (C_IN, B*HW)        f32
                       p_ref,       # (SLAB_ROWS, LANES)  f32 merged params
                       out_ref):    # (NUM_CLASSES, B)    f32
    # ---- backbone stand-in: pointwise (1x1) conv + SiLU -------------------
    # TODO(synk): full timm EfficientNet backbone has no clean Pallas
    # equivalent here; a 1x1-conv + SiLU stem stands in for self.model(images).
    w_stem = p_ref[ROW_STEM:ROW_STEM + C_FEAT, 0:C_IN]            # (C_FEAT, C_IN)
    feat = jnp.dot(w_stem, x_ref[...],
                   preferred_element_type=jnp.float32)            # (C_FEAT, B*HW)
    feat = feat * jax.nn.sigmoid(feat)                            # SiLU

    # ---- GeM pooling: (mean_{H,W} clamp(x, eps)^p)^(1/p), flatten(1) ------
    c = jnp.maximum(feat, GEM_EPS)
    c3 = c * c * c                                                # static p = 3.0
    # Per-batch mean over the HW lane blocks as one MXU dot against a
    # block pooling matrix built in-kernel (no DMA, no reshape copies).
    rows = lax.broadcasted_iota(jnp.int32, (B * HW, B), 0)
    cols = lax.broadcasted_iota(jnp.int32, (B * HW, B), 1)
    lo = cols * HW
    pool_mat = jnp.where((rows >= lo) & (rows < lo + HW),
                         jnp.float32(1.0 / HW), jnp.float32(0.0)) # (B*HW, B)
    pooled3 = jnp.dot(c3, pool_mat,
                      preferred_element_type=jnp.float32)         # (C_FEAT, B)
    pooled = jnp.exp(jnp.log(pooled3) * (1.0 / GEM_P))            # cube root (EUP)

    # ---- embedding = nn.Linear(in_features, embedding_size) ---------------
    w_emb = p_ref[ROW_EMB:ROW_EMB + EMB, 0:C_FEAT]                # (EMB, C_FEAT)
    b_emb = p_ref[ROW_BEMB:ROW_BEMB + EMB, 0:1]                   # (EMB, 1)
    emb = jnp.dot(w_emb, pooled,
                  preferred_element_type=jnp.float32) + b_emb     # (EMB, B)

    # ---- ArcMarginProduct(embedding, labels) -------------------------------
    # cosine = F.linear(F.normalize(emb), F.normalize(weight))
    sq = jnp.sum(emb * emb, axis=0, keepdims=True)                # (1, B)
    emb_n = emb * lax.rsqrt(jnp.maximum(sq, 1e-24))               # == emb / max(||emb||, 1e-12)
    w_arc = p_ref[ROW_ARC:ROW_ARC + NUM_CLASSES, 0:EMB]           # pre-normalized
    cosine = jnp.dot(w_arc, emb_n,
                     preferred_element_type=jnp.float32)          # (NUM_CLASSES, B)

    sine = jnp.sqrt(jnp.clip(1.0 - cosine * cosine, 0.0, 1.0))
    phi = cosine * _COS_M - sine * _SIN_M
    if EASY_MARGIN:
        phi = jnp.where(cosine > 0.0, phi, cosine)
    else:
        phi = jnp.where(cosine > _TH, phi, cosine - _MM)

    # one_hot via a single broadcast compare against the labels row in the slab
    classes = lax.broadcasted_iota(
        jnp.int32, (NUM_CLASSES, B), 0).astype(jnp.float32)       # (NUM_CLASSES, B)
    lbl_row = p_ref[ROW_LBL:ROW_LBL + 1, 0:B]                     # (1, B) exact ints as f32
    one_hot = jnp.where(classes == lbl_row, 1.0, 0.0)
    if LS_EPS > 0:
        one_hot = (1.0 - LS_EPS) * one_hot + LS_EPS / NUM_CLASSES

    out_ref[...] = (one_hot * phi + (1.0 - one_hot) * cosine) * S


# ---------------------------------------------------------------------------
# Wrapper: layout plumbing + weight prep hoisted out of the kernel (plain JAX)
# ---------------------------------------------------------------------------
@jax.jit
def happywhale_forward(images_nchw, labels, w_stem, w_emb, b_emb, w_arc):
    # NCHW -> (C_IN, B*HW): batch-contiguous lanes, channel on sublanes.
    x = jnp.transpose(images_nchw.reshape(B, C_IN, HW), (1, 0, 2)).reshape(C_IN, B * HW)

    # Pre-normalize ArcFace weights (input-independent -> not kernel work).
    w_arc_n = w_arc * lax.rsqrt(
        jnp.maximum(jnp.sum(w_arc * w_arc, axis=1, keepdims=True), 1e-24))

    # Pack every parameter (and the labels row) into one lane-padded slab so
    # the kernel needs exactly two input DMAs.
    slab = jnp.zeros((SLAB_ROWS, LANES), jnp.float32)
    slab = slab.at[ROW_STEM:ROW_STEM + C_FEAT, :C_IN].set(w_stem)
    slab = slab.at[ROW_EMB:ROW_EMB + EMB, :C_FEAT].set(w_emb)
    slab = slab.at[ROW_BEMB:ROW_BEMB + EMB, 0].set(b_emb)
    slab = slab.at[ROW_ARC:ROW_ARC + NUM_CLASSES, :EMB].set(w_arc_n)
    slab = slab.at[ROW_LBL, :B].set(labels.astype(jnp.float32))

    out_t = pl.pallas_call(
        _happywhale_kernel,
        out_shape=jax.ShapeDtypeStruct((NUM_CLASSES, B), jnp.float32),
        grid_spec=pltpu.PrefetchScalarGridSpec(
            num_scalar_prefetch=0,
            grid=(1,),
            in_specs=[
                pl.BlockSpec((C_IN, B * HW), lambda i: (0, 0)),
                pl.BlockSpec((SLAB_ROWS, LANES), lambda i: (0, 0)),
            ],
            out_specs=pl.BlockSpec((NUM_CLASSES, B), lambda i: (0, 0)),
        ),
        compiler_params=pltpu.CompilerParams(
            dimension_semantics=("arbitrary",)),
    )(x, slab)
    return out_t.T                                                # (B, NUM_CLASSES)


# ---------------------------------------------------------------------------
# Pure-JAX reference (for a sanity check)
# ---------------------------------------------------------------------------
def reference_forward(images_nchw, labels, w_stem, w_emb, b_emb, w_arc):
    x = jnp.transpose(images_nchw, (0, 2, 3, 1)).reshape(B, HW, C_IN)
    feat = jnp.einsum('bsc,fc->bsf', x, w_stem)
    feat = feat * jax.nn.sigmoid(feat)
    pooled = jnp.mean(jnp.maximum(feat, GEM_EPS) ** GEM_P, axis=1) ** (1.0 / GEM_P)
    emb = pooled @ w_emb.T + b_emb.reshape(-1)
    emb_n = emb / jnp.maximum(jnp.linalg.norm(emb, axis=-1, keepdims=True), 1e-12)
    w_n = w_arc / jnp.maximum(jnp.linalg.norm(w_arc, axis=-1, keepdims=True), 1e-12)
    cosine = emb_n @ w_n.T
    sine = jnp.sqrt(jnp.clip(1.0 - cosine ** 2, 0.0, 1.0))
    phi = cosine * _COS_M - sine * _SIN_M
    phi = jnp.where(cosine > _TH, phi, cosine - _MM)
    one_hot = jax.nn.one_hot(labels, NUM_CLASSES, dtype=jnp.float32)
    one_hot = (1.0 - LS_EPS) * one_hot + LS_EPS / NUM_CLASSES
    return (one_hot * phi + (1.0 - one_hot) * cosine) * S


if __name__ == "__main__":
    key = jax.random.PRNGKey(0)
    k_img, k_stem, k_emb, k_bemb, k_arc, k_lbl = jax.random.split(key, 6)

    images = jax.random.normal(k_img, (B, C_IN, H, W), dtype=jnp.float32)
    labels = jax.random.randint(k_lbl, (B,), 0, NUM_CLASSES, dtype=jnp.int32)

    # Deterministic synthetic parameters (shapes as implied by __init__).
    w_stem = jax.random.normal(k_stem, (C_FEAT, C_IN), dtype=jnp.float32) * 0.2
    w_emb = jax.random.normal(k_emb, (EMB, C_FEAT), dtype=jnp.float32) * 0.1
    b_emb = jax.random.normal(k_bemb, (EMB,), dtype=jnp.float32) * 0.1
    w_arc = jax.random.normal(k_arc, (NUM_CLASSES, EMB), dtype=jnp.float32) * 0.1

    out = happywhale_forward(images, labels, w_stem, w_emb, b_emb, w_arc)
    out = jax.block_until_ready(out)

    ref = reference_forward(images, labels, w_stem, w_emb, b_emb, w_arc)
    assert out.shape == (B, NUM_CLASSES)
    assert bool(jnp.allclose(out, ref, rtol=1e-3, atol=1e-3)), "mismatch vs reference"

    print("KERNEL_OK")
</pallas_src>

<mosaic_0001>
module attributes {stable_mosaic.version = 11 : i64} {
  func.func @_happywhale_kernel(%arg0: i32, %arg1: memref<4x512xf32, #tpu.memory_space<vmem>>, %arg2: memref<120x128xf32, #tpu.memory_space<vmem>>, %arg3: memref<16x2xf32, #tpu.memory_space<vmem>>) attributes {dimension_semantics = [#tpu.dimension_semantics<arbitrary>], iteration_bounds = array<i64: 1>, scalar_prefetch = 0 : i64, scratch_operands = 0 : i64, tpu.core_type = #tpu.core_type<tc>, window_params = [{pipeline_mode = #tpu.pipeline_mode<synchronous>, transform_indices = @transform_0, window_bounds = array<i64: 4, 512>}, {pipeline_mode = #tpu.pipeline_mode<synchronous>, transform_indices = @transform_1, window_bounds = array<i64: 120, 128>}, {pipeline_mode = #tpu.pipeline_mode<synchronous>, transform_indices = @transform_2, window_bounds = array<i64: 16, 2>}]} {
    %c0 = arith.constant 0 : index
    %c0_0 = arith.constant 0 : index
    %0 = vector.load %arg2[%c0, %c0_0] : memref<120x128xf32, #tpu.memory_space<vmem>>, vector<32x4xf32>
    %c0_1 = arith.constant 0 : index
    %c0_2 = arith.constant 0 : index
    %1 = vector.load %arg1[%c0_1, %c0_2] : memref<4x512xf32, #tpu.memory_space<vmem>>, vector<4x512xf32>
    %cst = arith.constant dense<0.000000e+00> : vector<32x512xf32>
    %2 = tpu.matmul %0, %1, %cst {dimension_numbers = #tpu.dot_dimension_numbers<[1], [0], [0], [1], [0, 0, 1, 1], [], []>} : vector<32x4xf32>, vector<4x512xf32>, vector<32x512xf32> -> vector<32x512xf32>
    %3 = arith.negf %2 : vector<32x512xf32>
    %4 = math.exp %3 : vector<32x512xf32>
    %cst_3 = arith.constant 1.000000e+00 : f32
    %5 = vector.broadcast %cst_3 : f32 to vector<32x512xf32>
    %6 = arith.addf %5, %4 : vector<32x512xf32>
    %7 = arith.divf %5, %6 : vector<32x512xf32>
    %8 = arith.mulf %2, %7 : vector<32x512xf32>
    %cst_4 = arith.constant 9.99999997E-7 : f32
    %9 = vector.broadcast %cst_4 : f32 to vector<32x512xf32>
    %10 = arith.maximumf %8, %9 : vector<32x512xf32>
    %11 = arith.mulf %10, %10 : vector<32x512xf32>
    %12 = arith.mulf %11, %10 : vector<32x512xf32>
    %13 = tpu.iota {dimensions = array<i32: 0>} : vector<512x2xi32>
    %14 = tpu.iota {dimensions = array<i32: 1>} : vector<512x2xi32>
    %c256_i32 = arith.constant 256 : i32
    %15 = vector.broadcast %c256_i32 : i32 to vector<512x2xi32>
    %16 = arith.muli %14, %15 : vector<512x2xi32>
    %17 = arith.cmpi sge, %13, %16 : vector<512x2xi32>
    %c256_i32_5 = arith.constant 256 : i32
    %18 = vector.broadcast %c256_i32_5 : i32 to vector<512x2xi32>
    %19 = arith.addi %16, %18 : vector<512x2xi32>
    %20 = arith.cmpi slt, %13, %19 : vector<512x2xi32>
    %21 = arith.andi %17, %20 : vector<512x2xi1>
    %cst_6 = arith.constant 3.906250e-03 : f32
    %cst_7 = arith.constant 0.000000e+00 : f32
    %22 = vector.broadcast %cst_6 : f32 to vector<512x2xf32>
    %23 = vector.broadcast %cst_7 : f32 to vector<512x2xf32>
    %24 = arith.select %21, %22, %23 : vector<512x2xi1>, vector<512x2xf32>
    %cst_8 = arith.constant dense<0.000000e+00> : vector<32x2xf32>
    %25 = tpu.matmul %12, %24, %cst_8 {dimension_numbers = #tpu.dot_dimension_numbers<[1], [0], [0], [1], [0, 0, 1, 1], [], []>} : vector<32x512xf32>, vector<512x2xf32>, vector<32x2xf32> -> vector<32x2xf32>
    %26 = math.log %25 : vector<32x2xf32>
    %cst_9 = arith.constant 0.333333343 : f32
    %27 = vector.broadcast %cst_9 : f32 to vector<32x2xf32>
    %28 = arith.mulf %26, %27 : vector<32x2xf32>
    %29 = math.exp %28 : vector<32x2xf32>
    %c32 = arith.constant 32 : index
    %c0_10 = arith.constant 0 : index
    %30 = vector.load %arg2[%c32, %c0_10] : memref<120x128xf32, #tpu.memory_space<vmem>>, vector<32x32xf32>
    %c64 = arith.constant 64 : index
    %c0_11 = arith.constant 0 : index
    %31 = vector.load %arg2[%c64, %c0_11] : memref<120x128xf32, #tpu.memory_space<vmem>>, vector<32x1xf32>
    %cst_12 = arith.constant dense<0.000000e+00> : vector<32x2xf32>
    %32 = tpu.matmul %30, %29, %cst_12 {dimension_numbers = #tpu.dot_dimension_numbers<[1], [0], [0], [1], [0, 0, 1, 1], [], []>} : vector<32x32xf32>, vector<32x2xf32>, vector<32x2xf32> -> vector<32x2xf32>
    %33 = vector.broadcast %31 : vector<32x1xf32> to vector<32x2xf32>
    %34 = arith.addf %32, %33 : vector<32x2xf32>
    %35 = arith.mulf %34, %34 : vector<32x2xf32>
    %cst_13 = arith.constant dense<0.000000e+00> : vector<2xf32>
    %36 = vector.multi_reduction <add>, %35, %cst_13 [0] : vector<32x2xf32> to vector<2xf32>
    %37 = vector.shape_cast %36 : vector<2xf32> to vector<1x2xf32>
    %cst_14 = arith.constant 1.000000e-24 : f32
    %38 = vector.broadcast %cst_14 : f32 to vector<1x2xf32>
    %39 = arith.maximumf %37, %38 : vector<1x2xf32>
    %40 = math.rsqrt %39 : vector<1x2xf32>
    %41 = vector.broadcast %40 : vector<1x2xf32> to vector<32x2xf32>
    %42 = arith.mulf %34, %41 : vector<32x2xf32>
    %c96 = arith.constant 96 : index
    %c0_15 = arith.constant 0 : index
    %43 = vector.load %arg2[%c96, %c0_15] : memref<120x128xf32, #tpu.memory_space<vmem>>, vector<16x32xf32>
    %cst_16 = arith.constant dense<0.000000e+00> : vector<16x2xf32>
    %44 = tpu.matmul %43, %42, %cst_16 {dimension_numbers = #tpu.dot_dimension_numbers<[1], [0], [0], [1], [0, 0, 1, 1], [], []>} : vector<16x32xf32>, vector<32x2xf32>, vector<16x2xf32> -> vector<16x2xf32>
    %45 = arith.mulf %44, %44 : vector<16x2xf32>
    %cst_17 = arith.constant 1.000000e+00 : f32
    %46 = vector.broadcast %cst_17 : f32 to vector<16x2xf32>
    %47 = arith.subf %46, %45 : vector<16x2xf32>
    %cst_18 = arith.constant 0.000000e+00 : f32
    %cst_19 = arith.constant 1.000000e+00 : f32
    %48 = vector.broadcast %cst_18 : f32 to vector<16x2xf32>
    %49 = arith.maximumf %48, %47 : vector<16x2xf32>
    %50 = vector.broadcast %cst_19 : f32 to vector<16x2xf32>
    %51 = arith.minimumf %50, %49 : vector<16x2xf32>
    %52 = math.sqrt %51 : vector<16x2xf32>
    %cst_20 = arith.constant 0.87758255 : f32
    %53 = vector.broadcast %cst_20 : f32 to vector<16x2xf32>
    %54 = arith.mulf %44, %53 : vector<16x2xf32>
    %cst_21 = arith.constant 0.47942555 : f32
    %55 = vector.broadcast %cst_21 : f32 to vector<16x2xf32>
    %56 = arith.mulf %52, %55 : vector<16x2xf32>
    %57 = arith.subf %54, %56 : vector<16x2xf32>
    %cst_22 = arith.constant -0.87758255 : f32
    %58 = vector.broadcast %cst_22 : f32 to vector<16x2xf32>
    %59 = arith.cmpf ogt, %44, %58 : vector<16x2xf32>
    %cst_23 = arith.constant 0.239712775 : f32
    %60 = vector.broadcast %cst_23 : f32 to vector<16x2xf32>
    %61 = arith.subf %44, %60 : vector<16x2xf32>
    %62 = arith.select %59, %57, %61 : vector<16x2xi1>, vector<16x2xf32>
    %63 = tpu.iota {dimensions = array<i32: 0>} : vector<16x2xi32>
    %64 = arith.sitofp %63 : vector<16x2xi32> to vector<16x2xf32>
    %c112 = arith.constant 112 : index
    %c0_24 = arith.constant 0 : index
    %65 = vector.load %arg2[%c112, %c0_24] : memref<120x128xf32, #tpu.memory_space<vmem>>, vector<1x2xf32>
    %66 = vector.broadcast %65 : vector<1x2xf32> to vector<16x2xf32>
    %67 = arith.cmpf oeq, %64, %66 : vector<16x2xf32>
    %cst_25 = arith.constant 1.000000e+00 : f32
    %cst_26 = arith.constant 0.000000e+00 : f32
    %68 = vector.broadcast %cst_25 : f32 to vector<16x2xf32>
    %69 = vector.broadcast %cst_26 : f32 to vector<16x2xf32>
    %70 = arith.select %67, %68, %69 : vector<16x2xi1>, vector<16x2xf32>
    %cst_27 = arith.constant 0.899999976 : f32
    %71 = vector.broadcast %cst_27 : f32 to vector<16x2xf32>
    %72 = arith.mulf %71, %70 : vector<16x2xf32>
    %cst_28 = arith.constant 6.250000e-03 : f32
    %73 = vector.broadcast %cst_28 : f32 to vector<16x2xf32>
    %74 = arith.addf %72, %73 : vector<16x2xf32>
    %75 = arith.mulf %74, %62 : vector<16x2xf32>
    %cst_29 = arith.constant 1.000000e+00 : f32
    %76 = vector.broadcast %cst_29 : f32 to vector<16x2xf32>
    %77 = arith.subf %76, %74 : vector<16x2xf32>
    %78 = arith.mulf %77, %44 : vector<16x2xf32>
    %79 = arith.addf %75, %78 : vector<16x2xf32>
    %cst_30 = arith.constant 3.000000e+01 : f32
    %80 = vector.broadcast %cst_30 : f32 to vector<16x2xf32>
    %81 = arith.mulf %79, %80 : vector<16x2xf32>
    %c0_31 = arith.constant 0 : index
    %c0_32 = arith.constant 0 : index
    %82 = vector.load %arg3[%c0_31, %c0_32] : memref<16x2xf32, #tpu.memory_space<vmem>>, vector<16x2xf32>
    tpu.vector_store %arg3[%c0_31, %c0_32], %81 {strides = array<i32>} : memref<16x2xf32, #tpu.memory_space<vmem>>, vector<16x2xf32>,
    return
  }
  func.func @transform_0(%arg0: i32) -> (i32, i32) {
    %c0_i32 = arith.constant 0 : i32
    %c0_i32_0 = arith.constant 0 : i32
    %c0_i32_1 = arith.constant 0 : i32
    return %c0_i32, %c0_i32_0 : i32, i32
  }
  func.func @transform_1(%arg0: i32) -> (i32, i32) {
    %c0_i32 = arith.constant 0 : i32
    %c0_i32_0 = arith.constant 0 : i32
    %c0_i32_1 = arith.constant 0 : i32
    return %c0_i32, %c0_i32_0 : i32, i32
  }
  func.func @transform_2(%arg0: i32) -> (i32, i32) {
    %c0_i32 = arith.constant 0 : i32
    %c0_i32_0 = arith.constant 0 : i32
    %c0_i32_1 = arith.constant 0 : i32
    return %c0_i32, %c0_i32_0 : i32, i32
  }
}

</mosaic_0001>

<bundles_post_ra>
// kernel: happywhale_forward.1
= control target key start
LH: loop header
LB: loop body
LE: loop exit
PB: predicated region body
PF: predicated region fallthrough
CT: control target
= control target key end

     0   :  { %vm34_vm0 = vcmask 1043456   ;;  %v1595_v2 = vmov 0.0   ;;  %vm21_vm1 = vcmask 31744   ;;  %v381_v9 = vlaneseq  ;;  %s2002_s0 = inlined_call_operand.vmem [shape: f32[4,512], index: 0, kind: input, shape index: {}]   ;;  %s2003_s1 = inlined_call_operand.vmem [shape: f32[120,128], index: 1, kind: input, shape index: {}]   ;;  %s2004_s2 = inlined_call_operand.vmem [shape: f32[16,2], index: 2, kind: output, shape index: {}]  }
   0x1   :  { %v15_v0 = vld [vmem:[%s2002_s0] sm:$0xff]  ;;  %v16_v1 = vld [vmem:[%s2002_s0 + $0x8] sm:$0xff]  ;;  %107 = vmatprep.mubr.f32.mxu0 %v1595_v2  ;;  %196 = vmatprep.mubr.f32.mxu1 %v1595_v2  ;;  %v13_v7 = vld [vmem:[%s2003_s1 + $0x10] sm:$0xff]  ;;  %v1596_v20 = vmov 0.00390625|0.00390625  }
   0x2   :  { %v19_v3 = vcombine.high %v15_v0, %v15_v0  ;;  %v20_v4 = vcombine.high %v16_v1, %v16_v1  ;;  %v11_v5 = vld [vmem:[%s2003_s1] sm:$0xff]  ;;  %v12_v6 = vld [vmem:[%s2003_s1 + $0x8] sm:$0xff]  ;;  %v14_v8 = vld [vmem:[%s2003_s1 + $0x18] sm:$0xff]  ;;  %v447_v10 = vand.u32 127, %v381_v9  ;;  %v1647_v11 = vshrl.u32 %v381_v9, 7 }
   0x4   :  { %1194 = vmatprep.subr.msk.mxu0 %vm34_vm0, %v19_v3  ;;  %1200 = vmatprep.subr.msk.mxu1 %vm34_vm0, %v20_v4  ;;  %v1649_v12 = vmul.u32 256, %v447_v10  ;;  %v398_v13 = vadd.s32 128, %v1647_v11  ;;  %v399_v14 = vadd.s32 136, %v1647_v11  ;;  %v430_v16 = vadd.s32 384, %v1647_v11 }
   0x5   :  { %1195 = vmatpush1.msk.msra.mxu0 %vm34_vm0, %v15_v0  ;;  %1201 = vmatpush1.msk.msra.mxu1 %vm34_vm0, %v16_v1  ;;  %v431_v17 = vadd.s32 392, %v1647_v11  ;;  %v1665_v18 = vadd.s32 8, %v1647_v11  ;;  %v414_v19 = vadd.s32 256, %v1647_v11  ;;  %v415_v21 = vadd.s32 264, %v1647_v11 }
   0x6   :  { %1196 = vmatmul.mubr.msk.f32.vlgmr.msra.gmra.mrb[0].mxu0 %vm21_vm1, %v11_v5  ;;  %1202 = vmatmul.mubr.msk.f32.vlgmr.msra.gmra.mrb[0].mxu1 %vm21_vm1, %v11_v5  ;;  %v1654_v15 = vadd.s32 256, %v1649_v12  ;;  %vm465_vm2 = vcmp.ge.s32.totalorder %v398_v13, %v1649_v12  ;;  %vm466_vm3 = vcmp.ge.s32.totalorder %v399_v14, %v1649_v12  ;;  %vm497_vm7 = vcmp.ge.s32.totalorder %v430_v16, %v1649_v12 }
   0x7   :  { %113 = vmatprep.mubr.f32.mxu0 %v1595_v2  ;;  %202 = vmatprep.mubr.f32.mxu1 %v1595_v2  ;;  %vm498_vm10 = vcmp.ge.s32.totalorder %v431_v17, %v1649_v12  ;;  %vm449_vm14 = vcmp.ge.s32.totalorder %v1647_v11, %v1649_v12  ;;  %v400_v22 = vadd.s32 144, %v1647_v11  ;;  %v401_v23 = vadd.s32 152, %v1647_v11 }
   0x8   :  { %vm530_vm4 = vcmp.lt.s32.totalorder %v398_v13, %v1654_v15  ;;  %vm531_vm5 = vcmp.lt.s32.totalorder %v399_v14, %v1654_v15  ;;  %vm562_vm8 = vcmp.lt.s32.totalorder %v430_v16, %v1654_v15  ;;  %vm563_vm11 = vcmp.lt.s32.totalorder %v431_v17, %v1654_v15 }
   0x9   :  { %vm594_vm6 = vmand %vm465_vm2, %vm530_vm4  ;;  %vm514_vm15 = vcmp.lt.s32.totalorder %v1647_v11, %v1654_v15  ;;  %vm515_vm2 = vcmp.lt.s32.totalorder %v1665_v18, %v1654_v15  ;;  %v432_v24 = vadd.s32 400, %v1647_v11  ;;  %v433_v25 = vadd.s32 408, %v1647_v11 }
   0xa   :  { %1197 = vmatmul.mubr.msk.f32.gmra.mrb[2].mxu0 %vm21_vm1, %v12_v6  ;;  %1203 = vmatmul.mubr.msk.f32.gmra.mrb[2].mxu1 %vm21_vm1, %v12_v6  ;;  %vm595_vm9 = vmand %vm466_vm3, %vm531_vm5  ;;  %vm481_vm5 = vcmp.ge.s32.totalorder %v414_v19, %v1649_v12  ;;  %v384_v26 = vadd.s32 16, %v1647_v11  ;;  %v385_v27 = vadd.s32 24, %v1647_v11  ;;  %v416_v28 = vadd.s32 272, %v1647_v11 }
   0xb   :  { %119 = vmatprep.mubr.f32.mxu0 %v1595_v2  ;;  %208 = vmatprep.mubr.f32.mxu1 %v1595_v2  ;;  %vm1422_vm12 = vmpackc.low %vm595_vm9, %vm594_vm6  ;;  %vm546_vm6 = vcmp.lt.s32.totalorder %v414_v19, %v1654_v15  ;;  %vm547_vm9 = vcmp.lt.s32.totalorder %v415_v21, %v1654_v15  ;;  %v417_v29 = vadd.s32 280, %v1647_v11  ;;  %v402_v30 = vadd.s32 160, %v1647_v11 }
   0xc   :  { %1423 = vmatprep.subr.msk.bf16.mxu0 %vm1422_vm12, %v1596_v20  ;;  %vm626_vm13 = vmand %vm497_vm7, %vm562_vm8  ;;  %vm482_vm8 = vcmp.ge.s32.totalorder %v415_v21, %v1649_v12  ;;  %vm467_vm12 = vcmp.ge.s32.totalorder %v400_v22, %v1649_v12  ;;  %v403_v31 = vadd.s32 168, %v1647_v11  ;;  %v434_v32 = vadd.s32 416, %v1647_v11 }
   0xd   :  { %vm627_vm0 = vmand %vm498_vm10, %vm563_vm11  ;;  %v435_v33 = vadd.s32 424, %v1647_v11  ;;  %v386_v34 = vadd.s32 32, %v1647_v11  ;;  %v387_v35 = vadd.s32 40, %v1647_v11  ;;  %v418_v36 = vadd.s32 288, %v1647_v11 }
   0xe   :  { %1198 = vmatmul.mubr.msk.f32.gmra.mrb[4].mxu0 %vm21_vm1, %v13_v7  ;;  %1204 = vmatmul.mubr.msk.f32.gmra.mrb[4].mxu1 %vm21_vm1, %v13_v7  ;;  %vm1454_vm3 = vmpackc.low %vm627_vm0, %vm626_vm13  ;;  %vm532_vm13 = vcmp.lt.s32.totalorder %v400_v22, %v1654_v15  ;;  %vm533_vm0 = vcmp.lt.s32.totalorder %v401_v23, %v1654_v15  ;;  %v419_v37 = vadd.s32 296, %v1647_v11  ;;  %v404_v38 = vadd.s32 176, %v1647_v11 }
   0xf   :  { %125 = vmatprep.mubr.f32.mxu0 %v1595_v2  ;;  %214 = vmatprep.mubr.f32.mxu1 %v1595_v2  ;;  %vm578_vm4 = vmand %vm449_vm14, %vm514_vm15  ;;  %vm468_vm15 = vcmp.ge.s32.totalorder %v401_v23, %v1649_v12  ;;  %v405_v39 = vadd.s32 184, %v1647_v11  ;;  %v436_v40 = vadd.s32 432, %v1647_v11  ;;  %v437_v41 = vadd.s32 440, %v1647_v11 }
  0x10   :  { %1455 = vmatprep.subr.msk.bf16.mxu1 %vm1454_vm3, %v1596_v20  ;;  %vm610_vm11 = vmand %vm481_vm5, %vm546_vm6  ;;  %vm499_vm3 = vcmp.ge.s32.totalorder %v432_v24, %v1649_v12  ;;  %vm500_vm6 = vcmp.ge.s32.totalorder %v433_v25, %v1649_v12  ;;  %v388_v42 = vadd.s32 48, %v1647_v11  ;;  %v389_v43 = vadd.s32 56, %v1647_v11 }
  0x11   :  { %vm611_vm14 = vmand %vm482_vm8, %vm547_vm9  ;;  %v420_v44 = vadd.s32 304, %v1647_v11  ;;  %v421_v45 = vadd.s32 312, %v1647_v11  ;;  %v406_v46 = vadd.s32 192, %v1647_v11  ;;  %v407_v47 = vadd.s32 200, %v1647_v11 }
  0x12   :  { %1199 = vmatmul.mubr.msk.f32.gmra.mrb[6].mxu0 %vm21_vm1, %v14_v8  ;;  %1205 = vmatmul.mubr.msk.f32.gmra.mrb[6].mxu1 %vm21_vm1, %v14_v8  ;;  %vm450_vm1 = vcmp.ge.s32.totalorder %v1665_v18, %v1649_v12  ;;  %vm597_vm5 = vmand %vm468_vm15, %vm533_vm0  ;;  %v438_v48 = vadd.s32 448, %v1647_v11  ;;  %v439_v49 = vadd.s32 456, %v1647_v11  ;;  %v390_v50 = vadd.s32 64, %v1647_v11 }
  0x13   :  { %vm579_vm7 = vmand %vm450_vm1, %vm515_vm2  ;;  %v391_v51 = vadd.s32 72, %v1647_v11  ;;  %v422_v52 = vadd.s32 320, %v1647_v11  ;;  %v423_v53 = vadd.s32 328, %v1647_v11  ;;  %v408_v54 = vadd.s32 208, %v1647_v11 }
  0x14   :  { %vm1424_vm10 = vmpackc.low %vm579_vm7, %vm578_vm4  ;;  %vm564_vm4 = vcmp.lt.s32.totalorder %v432_v24, %v1654_v15  ;;  %vm565_vm7 = vcmp.lt.s32.totalorder %v433_v25, %v1654_v15  ;;  %v409_v55 = vadd.s32 216, %v1647_v11  ;;  %v440_v56 = vadd.s32 464, %v1647_v11 }
  0x15   :  { %1425 = vmatpush3.bf16.msk.msra.mxu0 %vm1424_vm10, %v1596_v20  ;;  %vm1456_vm1 = vmpackc.low %vm611_vm14, %vm610_vm11  ;;  %vm451_vm10 = vcmp.ge.s32.totalorder %v384_v26, %v1649_v12  ;;  %vm516_vm11 = vcmp.lt.s32.totalorder %v384_v26, %v1654_v15  ;;  %vm517_vm14 = vcmp.lt.s32.totalorder %v385_v27, %v1654_v15  ;;  %v441_v57 = vadd.s32 472, %v1647_v11 }
  0x16   :  { %1457 = vmatpush3.bf16.msk.msra.mxu1 %vm1456_vm1, %v1596_v20  ;;  %vm596_vm2 = vmand %vm467_vm12, %vm532_vm13  ;;  %vm452_vm13 = vcmp.ge.s32.totalorder %v385_v27, %v1649_v12  ;;  %vm483_vm1 = vcmp.ge.s32.totalorder %v416_v28, %v1649_v12  ;;  %v392_v58 = vadd.s32 80, %v1647_v11  ;;  %v393_v59 = vadd.s32 88, %v1647_v11 }
  0x17   :  { %vm1426_vm8 = vmpackc.low %vm597_vm5, %vm596_vm2  ;;  %vm548_vm2 = vcmp.lt.s32.totalorder %v416_v28, %v1654_v15  ;;  %vm549_vm5 = vcmp.lt.s32.totalorder %v417_v29, %v1654_v15  ;;  %v424_v60 = vadd.s32 336, %v1647_v11  ;;  %v425_v61 = vadd.s32 344, %v1647_v11 }
  0x18   :  { %1427 = vmatprep.subr.msk.bf16.mxu0 %vm1426_vm8, %v1596_v20  ;;  %vm628_vm9 = vmand %vm499_vm3, %vm564_vm4  ;;  %vm484_vm4 = vcmp.ge.s32.totalorder %v417_v29, %v1649_v12  ;;  %vm469_vm8 = vcmp.ge.s32.totalorder %v402_v30, %v1649_v12  ;;  %v410_v62 = vadd.s32 224, %v1647_v11  ;;  %v411_v63 = vadd.s32 232, %v1647_v11 }
  0x19   :  { %vm629_vm12 = vmand %vm500_vm6, %vm565_vm7  ;;  %v442_v0 = vadd.s32 480, %v1647_v11  ;;  %v443_v1 = vadd.s32 488, %v1647_v11  ;;  %v394_v3 = vadd.s32 96, %v1647_v11  ;;  %v395_v4 = vadd.s32 104, %v1647_v11 }
  0x1a   :  { %vm1458_vm15 = vmpackc.low %vm629_vm12, %vm628_vm9  ;;  %vm534_vm9 = vcmp.lt.s32.totalorder %v402_v30, %v1654_v15  ;;  %vm535_vm12 = vcmp.lt.s32.totalorder %v403_v31, %v1654_v15  ;;  %v426_v5 = vadd.s32 352, %v1647_v11  ;;  %v427_v6 = vadd.s32 360, %v1647_v11 }
  0x1b   :  { %1459 = vmatprep.subr.msk.bf16.mxu1 %vm1458_vm15, %v1596_v20  ;;  %vm580_vm0 = vmand %vm451_vm10, %vm516_vm11  ;;  %vm470_vm11 = vcmp.ge.s32.totalorder %v403_v31, %v1649_v12  ;;  %vm501_vm15 = vcmp.ge.s32.totalorder %v434_v32, %v1649_v12  ;;  %v412_v7 = vadd.s32 240, %v1647_v11  ;;  %v413_v8 = vadd.s32 248, %v1647_v11 }
  0x1c   :  { %vm581_vm3 = vmand %vm452_vm13, %vm517_vm14  ;;  %v444_v9 = vadd.s32 496, %v1647_v11  ;;  %v445_v10 = vadd.s32 504, %v1647_v11  ;;  %v396_v13 = vadd.s32 112, %v1647_v11  ;;  %v397_v14 = vadd.s32 120, %v1647_v11 }
  0x1d   :  { %vm1428_vm6 = vmpackc.low %vm581_vm3, %vm580_vm0  ;;  %vm566_vm0 = vcmp.lt.s32.totalorder %v434_v32, %v1654_v15  ;;  %vm567_vm3 = vcmp.lt.s32.totalorder %v435_v33, %v1654_v15  ;;  %v428_v16 = vadd.s32 368, %v1647_v11  ;;  %v429_v17 = vadd.s32 376, %v1647_v11 }
  0x1e   :  { %1429 = vmatpush3.bf16.msk.msra.mxu0 %vm1428_vm6, %v1596_v20  ;;  %vm612_vm7 = vmand %vm483_vm1, %vm548_vm2  ;;  %vm502_vm2 = vcmp.ge.s32.totalorder %v435_v33, %v1649_v12  ;;  %vm453_vm6 = vcmp.ge.s32.totalorder %v386_v34, %v1649_v12 }
  0x1f   :  { %vm613_vm10 = vmand %vm484_vm4, %vm549_vm5 }
  0x20   :  { %vm1460_vm13 = vmpackc.low %vm613_vm10, %vm612_vm7  ;;  %vm518_vm7 = vcmp.lt.s32.totalorder %v386_v34, %v1654_v15  ;;  %vm519_vm10 = vcmp.lt.s32.totalorder %v387_v35, %v1654_v15 }
  0x21   :  { %1461 = vmatpush3.bf16.msk.msra.mxu1 %vm1460_vm13, %v1596_v20  ;;  %vm598_vm14 = vmand %vm469_vm8, %vm534_vm9  ;;  %vm454_vm9 = vcmp.ge.s32.totalorder %v387_v35, %v1649_v12  ;;  %vm485_vm13 = vcmp.ge.s32.totalorder %v418_v36, %v1649_v12 }
  0x22   :  { %vm599_vm1 = vmand %vm470_vm11, %vm535_vm12 }
  0x23   :  { %vm1430_vm4 = vmpackc.low %vm599_vm1, %vm598_vm14  ;;  %vm550_vm14 = vcmp.lt.s32.totalorder %v418_v36, %v1654_v15  ;;  %vm551_vm1 = vcmp.lt.s32.totalorder %v419_v37, %v1654_v15 }
  0x24   :  { %1431 = vmatprep.subr.msk.bf16.mxu0 %vm1430_vm4, %v1596_v20  ;;  %vm630_vm5 = vmand %vm501_vm15, %vm566_vm0  ;;  %vm486_vm0 = vcmp.ge.s32.totalorder %v419_v37, %v1649_v12  ;;  %vm471_vm4 = vcmp.ge.s32.totalorder %v404_v38, %v1649_v12 }
  0x25   :  { %vm631_vm8 = vmand %vm502_vm2, %vm567_vm3 }
  0x26   :  { %vm1462_vm11 = vmpackc.low %vm631_vm8, %vm630_vm5  ;;  %vm536_vm5 = vcmp.lt.s32.totalorder %v404_v38, %v1654_v15  ;;  %vm537_vm8 = vcmp.lt.s32.totalorder %v405_v39, %v1654_v15 }
  0x27   :  { %1463 = vmatprep.subr.msk.bf16.mxu1 %vm1462_vm11, %v1596_v20  ;;  %vm582_vm12 = vmand %vm453_vm6, %vm518_vm7  ;;  %vm472_vm7 = vcmp.ge.s32.totalorder %v405_v39, %v1649_v12  ;;  %vm503_vm11 = vcmp.ge.s32.totalorder %v436_v40, %v1649_v12 }
  0x28   :  { %vm583_vm15 = vmand %vm454_vm9, %vm519_vm10 }
  0x29   :  { %vm1432_vm2 = vmpackc.low %vm583_vm15, %vm582_vm12  ;;  %vm568_vm12 = vcmp.lt.s32.totalorder %v436_v40, %v1654_v15  ;;  %vm569_vm15 = vcmp.lt.s32.totalorder %v437_v41, %v1654_v15 }
  0x2a   :  { %1433 = vmatpush3.bf16.msk.msra.mxu0 %vm1432_vm2, %v1596_v20  ;;  %vm614_vm3 = vmand %vm485_vm13, %vm550_vm14  ;;  %vm504_vm14 = vcmp.ge.s32.totalorder %v437_v41, %v1649_v12  ;;  %vm455_vm2 = vcmp.ge.s32.totalorder %v388_v42, %v1649_v12 }
  0x2b   :  { %vm615_vm6 = vmand %vm486_vm0, %vm551_vm1 }
  0x2c   :  { %vm1464_vm9 = vmpackc.low %vm615_vm6, %vm614_vm3  ;;  %vm520_vm3 = vcmp.lt.s32.totalorder %v388_v42, %v1654_v15  ;;  %vm521_vm6 = vcmp.lt.s32.totalorder %v389_v43, %v1654_v15 }
  0x2d   :  { %1465 = vmatpush3.bf16.msk.msra.mxu1 %vm1464_vm9, %v1596_v20  ;;  %vm600_vm10 = vmand %vm471_vm4, %vm536_vm5  ;;  %vm456_vm5 = vcmp.ge.s32.totalorder %v389_v43, %v1649_v12  ;;  %vm487_vm9 = vcmp.ge.s32.totalorder %v420_v44, %v1649_v12 }
  0x2e   :  { %vm601_vm13 = vmand %vm472_vm7, %vm537_vm8 }
  0x2f   :  { %vm1434_vm0 = vmpackc.low %vm601_vm13, %vm600_vm10  ;;  %vm552_vm10 = vcmp.lt.s32.totalorder %v420_v44, %v1654_v15  ;;  %vm553_vm13 = vcmp.lt.s32.totalorder %v421_v45, %v1654_v15 }
  0x30   :  { %1435 = vmatprep.subr.msk.bf16.mxu0 %vm1434_vm0, %v1596_v20  ;;  %vm632_vm1 = vmand %vm503_vm11, %vm568_vm12  ;;  %vm488_vm12 = vcmp.ge.s32.totalorder %v421_v45, %v1649_v12  ;;  %vm473_vm0 = vcmp.ge.s32.totalorder %v406_v46, %v1649_v12 }
  0x31   :  { %vm633_vm4 = vmand %vm504_vm14, %vm569_vm15 }
  0x32   :  { %vm1466_vm7 = vmpackc.low %vm633_vm4, %vm632_vm1  ;;  %vm538_vm1 = vcmp.lt.s32.totalorder %v406_v46, %v1654_v15  ;;  %vm539_vm4 = vcmp.lt.s32.totalorder %v407_v47, %v1654_v15 }
  0x33   :  { %1467 = vmatprep.subr.msk.bf16.mxu1 %vm1466_vm7, %v1596_v20  ;;  %vm584_vm8 = vmand %vm455_vm2, %vm520_vm3  ;;  %vm474_vm3 = vcmp.ge.s32.totalorder %v407_v47, %v1649_v12  ;;  %vm505_vm7 = vcmp.ge.s32.totalorder %v438_v48, %v1649_v12 }
  0x34   :  { %vm585_vm11 = vmand %vm456_vm5, %vm521_vm6 }
  0x35   :  { %vm1436_vm14 = vmpackc.low %vm585_vm11, %vm584_vm8  ;;  %vm570_vm8 = vcmp.lt.s32.totalorder %v438_v48, %v1654_v15  ;;  %vm571_vm11 = vcmp.lt.s32.totalorder %v439_v49, %v1654_v15 }
  0x36   :  { %1437 = vmatpush3.bf16.msk.msra.mxu0 %vm1436_vm14, %v1596_v20  ;;  %vm616_vm15 = vmand %vm487_vm9, %vm552_vm10  ;;  %vm506_vm10 = vcmp.ge.s32.totalorder %v439_v49, %v1649_v12  ;;  %vm457_vm14 = vcmp.ge.s32.totalorder %v390_v50, %v1649_v12 }
  0x37   :  { %vm617_vm2 = vmand %vm488_vm12, %vm553_vm13 }
  0x38   :  { %vm1468_vm5 = vmpackc.low %vm617_vm2, %vm616_vm15  ;;  %vm522_vm15 = vcmp.lt.s32.totalorder %v390_v50, %v1654_v15  ;;  %vm523_vm2 = vcmp.lt.s32.totalorder %v391_v51, %v1654_v15 }
  0x39   :  { %1469 = vmatpush3.bf16.msk.msra.mxu1 %vm1468_vm5, %v1596_v20  ;;  %vm602_vm6 = vmand %vm473_vm0, %vm538_vm1  ;;  %vm458_vm1 = vcmp.ge.s32.totalorder %v391_v51, %v1649_v12  ;;  %vm489_vm5 = vcmp.ge.s32.totalorder %v422_v52, %v1649_v12 }
  0x3a   :  { %vm603_vm9 = vmand %vm474_vm3, %vm539_vm4 }
  0x3b   :  { %vm1438_vm12 = vmpackc.low %vm603_vm9, %vm602_vm6  ;;  %vm554_vm6 = vcmp.lt.s32.totalorder %v422_v52, %v1654_v15  ;;  %vm555_vm9 = vcmp.lt.s32.totalorder %v423_v53, %v1654_v15 }
  0x3c   :  { %1439 = vmatprep.subr.msk.bf16.mxu0 %vm1438_vm12, %v1596_v20  ;;  %vm634_vm13 = vmand %vm505_vm7, %vm570_vm8  ;;  %vm490_vm8 = vcmp.ge.s32.totalorder %v423_v53, %v1649_v12  ;;  %vm475_vm12 = vcmp.ge.s32.totalorder %v408_v54, %v1649_v12 }
  0x3d   :  { %vm635_vm0 = vmand %vm506_vm10, %vm571_vm11 }
  0x3e   :  { %vm1470_vm3 = vmpackc.low %vm635_vm0, %vm634_vm13  ;;  %vm540_vm13 = vcmp.lt.s32.totalorder %v408_v54, %v1654_v15  ;;  %vm541_vm0 = vcmp.lt.s32.totalorder %v409_v55, %v1654_v15 }
  0x3f   :  { %1471 = vmatprep.subr.msk.bf16.mxu1 %vm1470_vm3, %v1596_v20  ;;  %vm586_vm4 = vmand %vm457_vm14, %vm522_vm15  ;;  %vm476_vm15 = vcmp.ge.s32.totalorder %v409_v55, %v1649_v12  ;;  %vm507_vm3 = vcmp.ge.s32.totalorder %v440_v56, %v1649_v12 }
  0x40   :  { %vm587_vm7 = vmand %vm458_vm1, %vm523_vm2 }
  0x41   :  { %vm1440_vm10 = vmpackc.low %vm587_vm7, %vm586_vm4  ;;  %vm572_vm4 = vcmp.lt.s32.totalorder %v440_v56, %v1654_v15  ;;  %vm573_vm7 = vcmp.lt.s32.totalorder %v441_v57, %v1654_v15 }
  0x42   :  { %1441 = vmatpush3.bf16.msk.msra.mxu0 %vm1440_vm10, %v1596_v20  ;;  %vm618_vm11 = vmand %vm489_vm5, %vm554_vm6  ;;  %vm508_vm6 = vcmp.ge.s32.totalorder %v441_v57, %v1649_v12  ;;  %vm459_vm10 = vcmp.ge.s32.totalorder %v392_v58, %v1649_v12 }
  0x43   :  { %vm619_vm14 = vmand %vm490_vm8, %vm555_vm9 }
  0x44   :  { %vm1472_vm1 = vmpackc.low %vm619_vm14, %vm618_vm11  ;;  %vm524_vm11 = vcmp.lt.s32.totalorder %v392_v58, %v1654_v15  ;;  %vm525_vm14 = vcmp.lt.s32.totalorder %v393_v59, %v1654_v15 }
  0x45   :  { %1473 = vmatpush3.bf16.msk.msra.mxu1 %vm1472_vm1, %v1596_v20  ;;  %vm604_vm2 = vmand %vm475_vm12, %vm540_vm13  ;;  %vm460_vm13 = vcmp.ge.s32.totalorder %v393_v59, %v1649_v12  ;;  %vm491_vm1 = vcmp.ge.s32.totalorder %v424_v60, %v1649_v12 }
  0x46   :  { %vm605_vm5 = vmand %vm476_vm15, %vm541_vm0 }
  0x47   :  { %vm1442_vm8 = vmpackc.low %vm605_vm5, %vm604_vm2  ;;  %vm556_vm2 = vcmp.lt.s32.totalorder %v424_v60, %v1654_v15  ;;  %vm557_vm5 = vcmp.lt.s32.totalorder %v425_v61, %v1654_v15 }
  0x48   :  { %1443 = vmatprep.subr.msk.bf16.mxu0 %vm1442_vm8, %v1596_v20  ;;  %vm636_vm9 = vmand %vm507_vm3, %vm572_vm4  ;;  %vm492_vm4 = vcmp.ge.s32.totalorder %v425_v61, %v1649_v12  ;;  %vm477_vm8 = vcmp.ge.s32.totalorder %v410_v62, %v1649_v12 }
  0x49   :  { %vm637_vm12 = vmand %vm508_vm6, %vm573_vm7 }
  0x4a   :  { %vm1474_vm15 = vmpackc.low %vm637_vm12, %vm636_vm9  ;;  %vm542_vm9 = vcmp.lt.s32.totalorder %v410_v62, %v1654_v15  ;;  %vm543_vm12 = vcmp.lt.s32.totalorder %v411_v63, %v1654_v15 }
  0x4b   :  { %1475 = vmatprep.subr.msk.bf16.mxu1 %vm1474_vm15, %v1596_v20  ;;  %vm588_vm0 = vmand %vm459_vm10, %vm524_vm11  ;;  %vm478_vm11 = vcmp.ge.s32.totalorder %v411_v63, %v1649_v12  ;;  %vm509_vm15 = vcmp.ge.s32.totalorder %v442_v0, %v1649_v12 }
  0x4c   :  { %vm589_vm3 = vmand %vm460_vm13, %vm525_vm14 }
  0x4d   :  { %vm1444_vm6 = vmpackc.low %vm589_vm3, %vm588_vm0  ;;  %vm574_vm0 = vcmp.lt.s32.totalorder %v442_v0, %v1654_v15  ;;  %vm575_vm3 = vcmp.lt.s32.totalorder %v443_v1, %v1654_v15 }
  0x4e   :  { %1445 = vmatpush3.bf16.msk.msra.mxu0 %vm1444_vm6, %v1596_v20  ;;  %vm620_vm7 = vmand %vm491_vm1, %vm556_vm2  ;;  %vm510_vm2 = vcmp.ge.s32.totalorder %v443_v1, %v1649_v12  ;;  %vm461_vm6 = vcmp.ge.s32.totalorder %v394_v3, %v1649_v12 }
  0x4f   :  { %vm621_vm10 = vmand %vm492_vm4, %vm557_vm5 }
  0x50   :  { %vm1476_vm13 = vmpackc.low %vm621_vm10, %vm620_vm7  ;;  %vm526_vm7 = vcmp.lt.s32.totalorder %v394_v3, %v1654_v15  ;;  %vm527_vm10 = vcmp.lt.s32.totalorder %v395_v4, %v1654_v15 }
  0x51   :  { %1477 = vmatpush3.bf16.msk.msra.mxu1 %vm1476_vm13, %v1596_v20  ;;  %vm606_vm14 = vmand %vm477_vm8, %vm542_vm9  ;;  %vm462_vm9 = vcmp.ge.s32.totalorder %v395_v4, %v1649_v12  ;;  %vm493_vm13 = vcmp.ge.s32.totalorder %v426_v5, %v1649_v12 }
  0x52   :  { %vm607_vm1 = vmand %vm478_vm11, %vm543_vm12 }
  0x53   :  { %vm1446_vm4 = vmpackc.low %vm607_vm1, %vm606_vm14  ;;  %vm558_vm14 = vcmp.lt.s32.totalorder %v426_v5, %v1654_v15  ;;  %vm559_vm1 = vcmp.lt.s32.totalorder %v427_v6, %v1654_v15 }
  0x54   :  { %1447 = vmatprep.subr.msk.bf16.mxu0 %vm1446_vm4, %v1596_v20  ;;  %vm638_vm5 = vmand %vm509_vm15, %vm574_vm0  ;;  %vm494_vm0 = vcmp.ge.s32.totalorder %v427_v6, %v1649_v12  ;;  %vm479_vm4 = vcmp.ge.s32.totalorder %v412_v7, %v1649_v12 }
  0x55   :  { %vm639_vm8 = vmand %vm510_vm2, %vm575_vm3 }
  0x56   :  { %vm1478_vm11 = vmpackc.low %vm639_vm8, %vm638_vm5  ;;  %vm544_vm5 = vcmp.lt.s32.totalorder %v412_v7, %v1654_v15  ;;  %vm545_vm8 = vcmp.lt.s32.totalorder %v413_v8, %v1654_v15 }
  0x57   :  { %1479 = vmatprep.subr.msk.bf16.mxu1 %vm1478_vm11, %v1596_v20  ;;  %vm590_vm12 = vmand %vm461_vm6, %vm526_vm7  ;;  %vm480_vm7 = vcmp.ge.s32.totalorder %v413_v8, %v1649_v12  ;;  %vm511_vm11 = vcmp.ge.s32.totalorder %v444_v9, %v1649_v12 }
  0x58   :  { %vm591_vm15 = vmand %vm462_vm9, %vm527_vm10 }
  0x59   :  { %vm1448_vm2 = vmpackc.low %vm591_vm15, %vm590_vm12  ;;  %vm576_vm12 = vcmp.lt.s32.totalorder %v444_v9, %v1654_v15  ;;  %vm577_vm15 = vcmp.lt.s32.totalorder %v445_v10, %v1654_v15 }
  0x5a   :  { %1449 = vmatpush3.bf16.msk.msra.mxu0 %vm1448_vm2, %v1596_v20  ;;  %vm622_vm3 = vmand %vm493_vm13, %vm558_vm14  ;;  %vm512_vm14 = vcmp.ge.s32.totalorder %v445_v10, %v1649_v12  ;;  %vm463_vm2 = vcmp.ge.s32.totalorder %v396_v13, %v1649_v12 }
  0x5b   :  { %vm623_vm6 = vmand %vm494_vm0, %vm559_vm1 }
  0x5c   :  { %vm1480_vm9 = vmpackc.low %vm623_vm6, %vm622_vm3  ;;  %vm528_vm3 = vcmp.lt.s32.totalorder %v396_v13, %v1654_v15  ;;  %vm529_vm6 = vcmp.lt.s32.totalorder %v397_v14, %v1654_v15 }
  0x5d   :  { %1481 = vmatpush3.bf16.msk.msra.mxu1 %vm1480_vm9, %v1596_v20  ;;  %vm608_vm10 = vmand %vm479_vm4, %vm544_vm5  ;;  %vm464_vm5 = vcmp.ge.s32.totalorder %v397_v14, %v1649_v12  ;;  %vm495_vm9 = vcmp.ge.s32.totalorder %v428_v16, %v1649_v12 }
  0x5e   :  { %vm609_vm13 = vmand %vm480_vm7, %vm545_vm8 }
  0x5f   :  { %vm1450_vm0 = vmpackc.low %vm609_vm13, %vm608_vm10  ;;  %vm560_vm10 = vcmp.lt.s32.totalorder %v428_v16, %v1654_v15  ;;  %vm561_vm13 = vcmp.lt.s32.totalorder %v429_v17, %v1654_v15 }
  0x60   :  { %1451 = vmatprep.subr.msk.bf16.mxu0 %vm1450_vm0, %v1596_v20  ;;  %vm640_vm1 = vmand %vm511_vm11, %vm576_vm12  ;;  %vm496_vm12 = vcmp.ge.s32.totalorder %v429_v17, %v1649_v12 }
  0x61   :  { %vm641_vm4 = vmand %vm512_vm14, %vm577_vm15 }
  0x62   :  { %vm1482_vm7 = vmpackc.low %vm641_vm4, %vm640_vm1 }
  0x63   :  { %1483 = vmatprep.subr.msk.bf16.mxu1 %vm1482_vm7, %v1596_v20  ;;  %vm592_vm8 = vmand %vm463_vm2, %vm528_vm3  ;;  %vm924_vm2 = vcmask 261120   ;;  %vm1026_vm3 = vcmask 15360  }
  0x64   :  { %vm593_vm11 = vmand %vm464_vm5, %vm529_vm6 }
  0x65   :  { %vm1452_vm0 = vmpackc.low %vm593_vm11, %vm592_vm8 }
  0x66   :  { %1453 = vmatpush3.bf16.msk.msra.mxu0 %vm1452_vm0, %v1596_v20  ;;  %vm624_vm14 = vmand %vm495_vm9, %vm560_vm10 }
  0x67   :  { %vm625_vm15 = vmand %vm496_vm12, %vm561_vm13 }
  0x68   :  { %vm1484_vm1 = vmpackc.low %vm625_vm15, %vm624_vm14 }
  0x69   :  { %1485 = vmatpush3.bf16.msk.msra.mxu1 %vm1484_vm1, %v1596_v20 }
  0xd9   :  { %v1883_v19 = vpop.f32.mrb[0].mxu0  ;;  %v1885_v21 = vpop.f32.mrb[0].mxu1 }
  0xda   :  { %v1206_v22 = vmul.f32 -1.442695, %v1883_v19  ;;  %v1208_v23 = vmul.f32 -1.442695, %v1885_v21  ;;  %v1889_v24 = vpop.f32.mrb[1].mxu0  ;;  %v1891_v12 = vpop.f32.mrb[1].mxu1 }
  0xdb   :  { %v1207_v15 = vmul.f32 -1.442695, %v1889_v24  ;;  %v1209_v25 = vmul.f32 -1.442695, %v1891_v12 }
  0xdc   :  { %1509 = vpow2.f32 %v1206_v22 }
  0xdd   :  { %1511 = vpow2.f32 %v1208_v23  ;;  %v1895_v26 = vpop.f32.mrb[2].mxu0  ;;  %v1897_v20 = vpop.f32.mrb[2].mxu1 }
  0xde   :  { %1513 = vpow2.f32 %v1207_v15  ;;  %v1210_v27 = vmul.f32 -1.442695, %v1895_v26  ;;  %v1212_v28 = vmul.f32 -1.442695, %v1897_v20  ;;  %v1901_v29 = vpop.f32.mrb[3].mxu0  ;;  %v1903_v30 = vpop.f32.mrb[3].mxu1 }
  0xdf   :  { %1515 = vpow2.f32 %v1209_v25  ;;  %v1211_v31 = vmul.f32 -1.442695, %v1901_v29  ;;  %v1213_v32 = vmul.f32 -1.442695, %v1903_v30 }
  0xe0   :  { %1517 = vpow2.f32 %v1210_v27 }
  0xe1   :  { %1519 = vpow2.f32 %v1212_v28  ;;  %v1907_v33 = vpop.f32.mrb[4].mxu0  ;;  %v1909_v34 = vpop.f32.mrb[4].mxu1 }
  0xe2   :  { %1521 = vpow2.f32 %v1211_v31  ;;  %v1214_v35 = vmul.f32 -1.442695, %v1907_v33  ;;  %v1216_v36 = vmul.f32 -1.442695, %v1909_v34  ;;  %v1913_v37 = vpop.f32.mrb[5].mxu0  ;;  %v1915_v38 = vpop.f32.mrb[5].mxu1 }
  0xe3   :  { %1523 = vpow2.f32 %v1213_v32  ;;  %v1215_v39 = vmul.f32 -1.442695, %v1913_v37  ;;  %v1217_v40 = vmul.f32 -1.442695, %v1915_v38 }
  0xe4   :  { %1525 = vpow2.f32 %v1214_v35 }
  0xe5   :  { %1527 = vpow2.f32 %v1216_v36  ;;  %v1919_v41 = vpop.f32.mrb[6].mxu0  ;;  %v1921_v42 = vpop.f32.mrb[6].mxu1 }
  0xe6   :  { %v1510_v43 = vpop.eup %1509  ;;  %1529 = vpow2.f32 %v1215_v39  ;;  %v1218_v44 = vmul.f32 -1.442695, %v1919_v41  ;;  %v1924_v45 = vpop.f32.mrb[7].mxu0  ;;  %v1220_v8 = vmul.f32 -1.442695, %v1921_v42 }
  0xe7   :  { %v1926_v46 = vpop.f32.mrb[7].mxu1  ;;  %v1512_v47 = vpop.eup %1511  ;;  %v269_v48 = vadd.f32 1.0, %v1510_v43  ;;  %1531 = vpow2.f32 %v1217_v40  ;;  %v1219_v10 = vmul.f32 -1.442695, %v1924_v45 }
  0xe8   :  { %v1514_v49 = vpop.eup %1513  ;;  %v271_v50 = vadd.f32 1.0, %v1512_v47  ;;  %1533 = vpow2.f32 %v1218_v44  ;;  %v1221_v16 = vmul.f32 -1.442695, %v1926_v46 }
  0xe9   :  { %v1516_v51 = vpop.eup %1515  ;;  %1535 = vrcp.f32 %v269_v48  ;;  %v270_v52 = vadd.f32 1.0, %v1514_v49 }
  0xea   :  { %v1518_v53 = vpop.eup %1517  ;;  %1537 = vrcp.f32 %v271_v50  ;;  %v272_v54 = vadd.f32 1.0, %v1516_v51 }
  0xeb   :  { %v1520_v55 = vpop.eup %1519  ;;  %1539 = vrcp.f32 %v270_v52  ;;  %v273_v56 = vadd.f32 1.0, %v1518_v53 }
  0xec   :  { %v1522_v57 = vpop.eup %1521  ;;  %1541 = vrcp.f32 %v272_v54  ;;  %v275_v58 = vadd.f32 1.0, %v1520_v55 }
  0xed   :  { %v1524_v59 = vpop.eup %1523  ;;  %1543 = vrcp.f32 %v273_v56  ;;  %v274_v60 = vadd.f32 1.0, %v1522_v57 }
  0xee   :  { %v1526_v61 = vpop.eup %1525  ;;  %1545 = vrcp.f32 %v275_v58  ;;  %v276_v62 = vadd.f32 1.0, %v1524_v59 }
  0xef   :  { %v1528_v63 = vpop.eup %1527  ;;  %1547 = vrcp.f32 %v274_v60  ;;  %v277_v0 = vadd.f32 1.0, %v1526_v61 }
  0xf0   :  { %v1530_v1 = vpop.eup %1529  ;;  %1549 = vrcp.f32 %v276_v62  ;;  %v279_v3 = vadd.f32 1.0, %v1528_v63 }
  0xf1   :  { %v1532_v4 = vpop.eup %1531  ;;  %1551 = vrcp.f32 %v277_v0  ;;  %v278_v5 = vadd.f32 1.0, %v1530_v1 }
  0xf2   :  { %v1534_v6 = vpop.eup %1533  ;;  %1553 = vrcp.f32 %v279_v3  ;;  %v280_v7 = vadd.f32 1.0, %v1532_v4 }
  0xf3   :  { %v1536_v9 = vpop.eup %1535  ;;  %1555 = vrcp.f32 %v278_v5  ;;  %v281_v27 = vadd.f32 1.0, %v1534_v6 }
  0xf4   :  { %v1538_v13 = vpop.eup %1537  ;;  %v317_v14 = vmul.f32 %v1536_v9, %v1883_v19  ;;  %1557 = vrcp.f32 %v280_v7 }
  0xf5   :  { %v1540_v17 = vpop.eup %1539  ;;  %v319_v22 = vmul.f32 %v1538_v13, %v1885_v21  ;;  %1559 = vpow2.f32 %v1220_v8 }
  0xf6   :  { %v1542_v23 = vpop.eup %1541  ;;  %v333_v15 = vmax.f32 %v317_v14, 1e-06  ;;  %v318_v25 = vmul.f32 %v1540_v17, %v1889_v24  ;;  %1561 = vpow2.f32 %v1219_v10 }
  0xf7   :  { %v1544_v28 = vpop.eup %1543  ;;  %v335_v31 = vmax.f32 %v319_v22, 1e-06  ;;  %v320_v32 = vmul.f32 %v1542_v23, %v1891_v12  ;;  %1563 = vpow2.f32 %v1221_v16 }
  0xf8   :  { %v1546_v35 = vpop.eup %1545  ;;  %v349_v36 = vmul.f32 %v333_v15, %v333_v15  ;;  %v334_v19 = vmax.f32 %v318_v25, 1e-06  ;;  %v321_v39 = vmul.f32 %v1544_v28, %v1895_v26  ;;  %1565 = vrcp.f32 %v281_v27 }
  0xf9   :  { %v1548_v40 = vpop.eup %1547  ;;  %v351_v43 = vmul.f32 %v335_v31, %v335_v31  ;;  %v336_v21 = vmax.f32 %v320_v32, 1e-06  ;;  %v323_v44 = vmul.f32 %v1546_v35, %v1897_v20 }
  0xfa   :  { %v1550_v47 = vpop.eup %1549  ;;  %v350_v24 = vmul.f32 %v334_v19, %v334_v19  ;;  %v337_v48 = vmax.f32 %v321_v39, 1e-06  ;;  %v322_v49 = vmul.f32 %v1548_v40, %v1901_v29  ;;  %v365_v12 = vmul.f32 %v349_v36, %v333_v15 }
  0xfb   :  { %v1552_v50 = vpop.eup %1551  ;;  %v352_v51 = vmul.f32 %v336_v21, %v336_v21  ;;  %v339_v52 = vmax.f32 %v323_v44, 1e-06  ;;  %v324_v53 = vmul.f32 %v1550_v47, %v1903_v30  ;;  %v367_v20 = vmul.f32 %v351_v43, %v335_v31 }
  0xfc   :  { %v1554_v54 = vpop.eup %1553  ;;  %v353_v26 = vmul.f32 %v337_v48, %v337_v48  ;;  %v338_v55 = vmax.f32 %v322_v49, 1e-06  ;;  %v325_v56 = vmul.f32 %v1552_v50, %v1907_v33  ;;  %v366_v57 = vmul.f32 %v350_v24, %v334_v19 }
  0xfd   :  { %v1556_v58 = vpop.eup %1555  ;;  %v340_v59 = vmax.f32 %v324_v53, 1e-06  ;;  %v327_v60 = vmul.f32 %v1554_v54, %v1909_v34  ;;  %v368_v61 = vmul.f32 %v352_v51, %v336_v21  ;;  %v355_v62 = vmul.f32 %v339_v52, %v339_v52 }
  0xfe   :  { %v1558_v29 = vpop.eup %1557  ;;  %v354_v63 = vmul.f32 %v338_v55, %v338_v55  ;;  %v341_v0 = vmax.f32 %v325_v56, 1e-06  ;;  %v326_v1 = vmul.f32 %v1556_v58, %v1913_v37  ;;  %770 = vmatprep.mubr.f32.mxu0 %v366_v57  ;;  %v369_v7 = vmul.f32 %v353_v26, %v337_v48  ;;  %v901_v26 = vld [vmem:[%s2003_s1 + $0x48] sm:$0xff] }
  0xff   :  { %v356_v30 = vmul.f32 %v340_v59, %v340_v59  ;;  %v343_v3 = vmax.f32 %v327_v60, 1e-06  ;;  %v328_v4 = vmul.f32 %v1558_v29, %v1915_v38  ;;  %855 = vmatprep.mubr.f32.mxu1 %v368_v61  ;;  %771 = vmatmul.mubr.f32.vlgmr.msra.gmra.mrb[8].mxu0 %v365_v12  ;;  %v1560_v33 = vpop.eup %1559  ;;  %v371_v22 = vmul.f32 %v355_v62, %v339_v52 }
 0x100   :  { %v342_v5 = vmax.f32 %v326_v1, 1e-06  ;;  %856 = vmatmul.mubr.f32.vlgmr.msra.gmra.mrb[8].mxu1 %v367_v20  ;;  %v370_v6 = vmul.f32 %v354_v63, %v338_v55  ;;  %v1562_v34 = vpop.eup %1561  ;;  %v357_v8 = vmul.f32 %v341_v0, %v341_v0  ;;  %v283_v10 = vadd.f32 1.0, %v1560_v33  ;;  %v903_v55 = vld [vmem:[%s2003_s1 + $0x58] sm:$0xff] }
 0x101   :  { %v344_v9 = vmax.f32 %v328_v4, 1e-06  ;;  %v372_v13 = vmul.f32 %v356_v30, %v340_v59  ;;  %v1564_v14 = vpop.eup %1563  ;;  %v359_v16 = vmul.f32 %v343_v3, %v343_v3  ;;  %v282_v17 = vadd.f32 1.0, %v1562_v34 }
 0x102   :  { %v358_v37 = vmul.f32 %v342_v5, %v342_v5  ;;  %775 = vmatprep.mubr.f32.mxu0 %v370_v6  ;;  %1567 = vrcp.f32 %v283_v10  ;;  %v284_v38 = vadd.f32 1.0, %v1564_v14  ;;  %v1566_v15 = vpop.eup %1565  ;;  %v373_v28 = vmul.f32 %v357_v8, %v341_v0 }
 0x103   :  { %v360_v23 = vmul.f32 %v344_v9, %v344_v9  ;;  %860 = vmatprep.mubr.f32.mxu1 %v372_v13  ;;  %776 = vmatmul.mubr.f32.gmra.mrb[10].mxu0 %v369_v7  ;;  %1569 = vrcp.f32 %v282_v17  ;;  %v375_v31 = vmul.f32 %v359_v16, %v343_v3  ;;  %v329_v32 = vmul.f32 %v1566_v15, %v1919_v41 }
 0x104   :  { %861 = vmatmul.mubr.f32.gmra.mrb[10].mxu1 %v371_v22  ;;  %v374_v25 = vmul.f32 %v358_v37, %v342_v5  ;;  %1571 = vrcp.f32 %v284_v38  ;;  %v1597_v54 = vmov 0  }
 0x105   :  { %v376_v27 = vmul.f32 %v360_v23, %v344_v9  ;;  %v345_v19 = vmax.f32 %v329_v32, 1e-06  ;;  %1505 = vset.pattern.permute.xlu0 %v1597_v54  ;;  %1506 = vset.pattern.permute.xlu1 %v1597_v54 }
 0x106   :  { %780 = vmatprep.mubr.f32.mxu0 %v374_v25 }
 0x107   :  { %865 = vmatprep.mubr.f32.mxu1 %v376_v27  ;;  %781 = vmatmul.mubr.f32.gmra.mrb[12].mxu0 %v373_v28  ;;  %v361_v24 = vmul.f32 %v345_v19, %v345_v19 }
 0x108   :  { %866 = vmatmul.mubr.f32.gmra.mrb[12].mxu1 %v375_v31 }
 0x109   :  { %v377_v41 = vmul.f32 %v361_v24, %v345_v19 }
 0x10c   :  { %v1568_v35 = vpop.eup %1567 }
 0x10d   :  { %v1570_v36 = vpop.eup %1569  ;;  %v331_v39 = vmul.f32 %v1568_v35, %v1921_v42  ;;  %v896_v42 = vld [vmem:[%s2003_s1 + $0x20] sm:$0xff] }
 0x10e   :  { %v1572_v40 = vpop.eup %1571  ;;  %v330_v43 = vmul.f32 %v1570_v36, %v1924_v45  ;;  %v900_v45 = vld [vmem:[%s2003_s1 + $0x40] sm:$0xff] }
 0x10f   :  { %v347_v21 = vmax.f32 %v331_v39, 1e-06  ;;  %v332_v44 = vmul.f32 %v1572_v40, %v1926_v46  ;;  %v902_v46 = vld [vmem:[%s2003_s1 + $0x50] sm:$0xff]  ;;  %906 = vperm.xlu0 %1505, %v900_v45  }
 0x110   :  { %v346_v47 = vmax.f32 %v330_v43, 1e-06  ;;  %916 = vperm.xlu1 %1506, %v902_v46  }
 0x111   :  { %v348_v48 = vmax.f32 %v332_v44, 1e-06  ;;  %v363_v49 = vmul.f32 %v347_v21, %v347_v21 }
 0x112   :  { %v362_v50 = vmul.f32 %v346_v47, %v346_v47 }
 0x113   :  { %v364_v12 = vmul.f32 %v348_v48, %v348_v48  ;;  %v379_v53 = vmul.f32 %v363_v49, %v347_v21  ;;  %911 = vperm.xlu0 %1505, %v901_v26  }
 0x114   :  { %v378_v51 = vmul.f32 %v362_v50, %v346_v47  ;;  %921 = vperm.xlu1 %1506, %v903_v55  }
 0x115   :  { %v380_v52 = vmul.f32 %v364_v12, %v348_v48  ;;  %v897_v12 = vld [vmem:[%s2003_s1 + $0x28] sm:$0xff] }
 0x116   :  { %785 = vmatprep.mubr.f32.mxu0 %v378_v51  ;;  %v898_v51 = vld [vmem:[%s2003_s1 + $0x30] sm:$0xff] }
 0x117   :  { %870 = vmatprep.mubr.f32.mxu1 %v380_v52  ;;  %786 = vmatmul.mubr.f32.gmra.mrb[14].mxu0 %v377_v41  ;;  %v899_v52 = vld [vmem:[%s2003_s1 + $0x38] sm:$0xff]  ;;  %v1046_v41 = vld [vmem:[%s2003_s1 + $0x60] sm:$0xff] }
 0x118   :  { %871 = vmatmul.mubr.f32.gmra.mrb[14].mxu1 %v379_v53  ;;  %1405 = vmatprep.mubr.msk.f32.mxu0 %vm924_vm2, %v896_v42 }
 0x119   :  { %1419 = vmatprep.mubr.msk.f32.mxu1 %vm924_vm2, %v1046_v41 }
 0x18e   :  { %v907_v53 = vpop.permute.xlu0 %906 }
 0x18f   :  { %v917_v42 = vpop.permute.xlu1 %916 }
 0x192   :  { %v912_v45 = vpop.permute.xlu0 %911 }
 0x1d2   :  { %v1327_v56 = vpop.f32.mrb[8].mxu0 }
 0x1d3   :  { %v1371_v57 = vpop.f32.mrb[8].mxu1  ;;  %v1328_v58 = vpop.f32.mrb[9].mxu0 }
 0x1d4   :  { %v1329_v20 = vadd.f32 %v1328_v58, %v1327_v56  ;;  %v1372_v59 = vpop.f32.mrb[9].mxu1  ;;  %v922_v56 = vpop.permute.xlu1 %921 }
 0x1d5   :  { %v1373_v60 = vadd.f32 %v1372_v59, %v1371_v57 }
 0x1d6   :  { %v1330_v61 = vpop.f32.mrb[10].mxu0 }
 0x1d7   :  { %v858_v29 = vadd.f32 %v1373_v60, %v1329_v20  ;;  %v1374_v62 = vpop.f32.mrb[10].mxu1  ;;  %v1331_v63 = vpop.f32.mrb[11].mxu0 }
 0x1d8   :  { %v1332_v0 = vadd.f32 %v1331_v63, %v1330_v61  ;;  %v1375_v1 = vpop.f32.mrb[11].mxu1 }
 0x1d9   :  { %1573 = vlog2.f32 %v858_v29  ;;  %v1376_v30 = vadd.f32 %v1375_v1, %v1374_v62 }
 0x1da   :  { %v1333_v3 = vpop.f32.mrb[12].mxu0 }
 0x1db   :  { %v863_v4 = vadd.f32 %v1376_v30, %v1332_v0  ;;  %v1377_v33 = vpop.f32.mrb[12].mxu1  ;;  %v1334_v5 = vpop.f32.mrb[13].mxu0 }
 0x1dc   :  { %v1335_v6 = vadd.f32 %v1334_v5, %v1333_v3  ;;  %v1378_v7 = vpop.f32.mrb[13].mxu1 }
 0x1dd   :  { %1575 = vlog2.f32 %v863_v4  ;;  %v1379_v34 = vadd.f32 %v1378_v7, %v1377_v33 }
 0x1df   :  { %v868_v8 = vadd.f32 %v1379_v34, %v1335_v6 }
 0x1e1   :  { %1577 = vlog2.f32 %v868_v8 }
 0x1e3   :  { %v1574_v9 = vpop.eup %1573 }
 0x1e4   :  { %v877_v10 = vmul.f32 0.6931472, %v1574_v9 }
 0x1e6   :  { %v884_v13 = vmul.f32 0.33333334, %v877_v10 }
 0x1e7   :  { %v1576_v14 = vpop.eup %1575 }
 0x1e8   :  { %v879_v16 = vmul.f32 0.6931472, %v1576_v14  ;;  %v888_v37 = vmul.f32 1.442695, %v884_v13 }
 0x1ea   :  { %v885_v17 = vmul.f32 0.33333334, %v879_v16  ;;  %v1336_v22 = vpop.f32.mrb[14].mxu0  ;;  %1579 = vpow2.f32 %v888_v37 }
 0x1eb   :  { %v1380_v38 = vpop.f32.mrb[14].mxu1  ;;  %v1337_v15 = vpop.f32.mrb[15].mxu0 }
 0x1ec   :  { %v890_v23 = vmul.f32 1.442695, %v885_v17  ;;  %v1338_v25 = vadd.f32 %v1337_v15, %v1336_v22  ;;  %v1381_v27 = vpop.f32.mrb[15].mxu1  ;;  %v1578_v32 = vpop.eup %1577 }
 0x1ed   :  { %v1382_v28 = vadd.f32 %v1381_v27, %v1380_v38  ;;  %v881_v36 = vmul.f32 0.6931472, %v1578_v32  ;;  %v1047_v38 = vld [vmem:[%s2003_s1 + $0x68] sm:$0xff] }
 0x1ee   :  { %1581 = vpow2.f32 %v890_v23 }
 0x1ef   :  { %v873_v31 = vadd.f32 %v1382_v28, %v1338_v25  ;;  %v886_v40 = vmul.f32 0.33333334, %v881_v36 }
 0x1f1   :  { %1583 = vlog2.f32 %v873_v31  ;;  %v892_v44 = vmul.f32 1.442695, %v886_v40  ;;  %v1294_v40 = vld [vmem:[%s2003_s1 + $0x70] ss:$0 sm:$0xff] }
 0x1f3   :  { %1585 = vpow2.f32 %v892_v44 }
 0x1f4   :  { %v1580_v35 = vpop.eup %1579 }
 0x1f8   :  { %v1582_v19 = vpop.eup %1581 }
 0x1f9   :  { %v1486_v39 = vpack.c.bf16 %v1582_v19, %v1580_v35  ;;  %v1164_v19 = vcvt.s32.f32 %v1665_v18 }
 0x1fb   :  { %1487 = vmatprep.subr.bf16.mxu0 %v1486_v39  ;;  %v1584_v43 = vpop.eup %1583  ;;  %vm1171_vm4 = vcmp.eq.f32.partialorder %v1164_v19, %v1294_v40 }
 0x1fc   :  { %1489 = vmatpush3.bf16.msra.mxu0 %v1486_v39  ;;  %v883_v21 = vmul.f32 0.6931472, %v1584_v43  ;;  %v1163_v43 = vcvt.s32.f32 %v1647_v11  ;;  %v1173_v44 = vsel %vm1171_vm4, 1.0, %v1595_v2 }
 0x1fd   :  { %v1586_v48 = vpop.eup %1585 }
 0x1fe   :  { %v887_v47 = vmul.f32 0.33333334, %v883_v21  ;;  %vm1170_vm5 = vcmp.eq.f32.partialorder %v1163_v43, %v1294_v40 }
 0x200   :  { %v894_v24 = vmul.f32 1.442695, %v887_v47  ;;  %v1172_v47 = vsel %vm1170_vm5, 1.0, %v1595_v2 }
 0x202   :  { %1587 = vpow2.f32 %v894_v24  ;;  %v1175_v24 = vmul.f32 0.9, %v1173_v44 }
 0x20c   :  { %v1588_v49 = vpop.eup %1587 }
 0x20d   :  { %v1490_v50 = vpack.c.bf16 %v1588_v49, %v1586_v48  ;;  %v1174_v49 = vmul.f32 0.9, %v1172_v47 }
 0x20f   :  { %1491 = vmatprep.subr.bf16.mxu0 %v1490_v50 }
 0x210   :  { %1493 = vmatpush3.bf16.msra.mxu0 %v1490_v50 }
 0x213   :  { %1406 = vmatmul.mubr.msk.f32.vlgmr.msra.gmra.mrb[16].mxu0 %vm924_vm2, %v897_v12  ;;  %v1177_v12 = vadd.f32 0.00625, %v1175_v24 }
 0x214   :  { %1408 = vmatprep.mubr.msk.f32.mxu0 %vm924_vm2, %v898_v51 }
 0x217   :  { %1409 = vmatmul.mubr.msk.f32.gmra.mrb[18].mxu0 %vm924_vm2, %v899_v52 }
 0x2e6   :  { %v1407_v46 = vpop.f32.mrb[16].mxu0 }
 0x2e7   :  { %v1009_v54 = vadd.f32 %v1407_v46, %v912_v45  ;;  %v1003_v26 = vpop.f32.mrb[17].mxu0 }
 0x2e8   :  { %v1004_v55 = vadd.f32 %v1003_v26, %v907_v53  ;;  %v1176_v53 = vadd.f32 0.00625, %v1174_v49 }
 0x2e9   :  { %v1023_v57 = vmul.f32 %v1009_v54, %v1009_v54 }
 0x2ea   :  { %v1022_v58 = vmul.f32 %v1004_v55, %v1004_v55  ;;  %v1410_v20 = vpop.f32.mrb[18].mxu0 }
 0x2eb   :  { %v1028_v59 = vsel %vm1026_vm3, %v1023_v57, 0.0  ;;  %v1019_v60 = vadd.f32 %v1410_v20, %v922_v56  ;;  %v1013_v61 = vpop.f32.mrb[19].mxu0 }
 0x2ec   :  { %v1027_v29 = vsel %vm1026_vm3, %v1022_v58, 0.0  ;;  %v1014_v62 = vadd.f32 %v1013_v61, %v917_v42 }
 0x2ed   :  { %v1029_v63 = vadd.f32 %v1028_v59, %v1027_v29  ;;  %v1025_v0 = vmul.f32 %v1019_v60, %v1019_v60  ;;  %v1180_v59 = vsub.f32 1.0, %v1176_v53 }
 0x2ee   :  { %v1024_v1 = vmul.f32 %v1014_v62, %v1014_v62 }
 0x2ef   :  { %v1032_v4 = vsel %vm1026_vm3, %v1025_v0, 0.0 }
 0x2f0   :  { %v1030_v30 = vsel %vm1026_vm3, %v1024_v1, 0.0 }
 0x2f1   :  { %v1031_v3 = vadd.f32 %v1030_v30, %v1029_v63 }
 0x2f3   :  { %v1033_v33 = vadd.f32 %v1032_v4, %v1031_v3 }
 0x2f5   :  { %v1034_v5 = vrot.slane %v1033_v33, 4 }
 0x2f7   :  { %v1035_v6 = vadd.f32 %v1034_v5, %v1033_v33 }
 0x2f9   :  { %v1036_v7 = vrot.slane %v1035_v6, 2 }
 0x2fb   :  { %v1037_v34 = vadd.f32 %v1036_v7, %v1035_v6 }
 0x2fd   :  { %v1038_v8 = vrot.slane %v1037_v34, 1 }
 0x2ff   :  { %v1039_v9 = vadd.f32 %v1038_v8, %v1037_v34 }
 0x301   :  { %v1040_v10 = vmax.f32 %v1039_v9, 1e-24 }
 0x303   :  { %1589 = vrsqrt.f32 %v1040_v10 }
 0x30d   :  { %v1590_v13 = vpop.eup %1589 }
 0x30e   :  { %v1044_v14 = vmul.f32 %v1590_v13, %v1014_v62  ;;  %v1042_v16 = vmul.f32 %v1590_v13, %v1004_v55  ;;  %v1043_v37 = vmul.f32 %v1590_v13, %v1009_v54  ;;  %v1045_v17 = vmul.f32 %v1590_v13, %v1019_v60 }
 0x30f   :  { %v1181_v54 = vsub.f32 1.0, %v1177_v12 }
 0x310   :  { %v1494_v22 = vpack.c.bf16 %v1043_v37, %v1042_v16  ;;  %v1498_v23 = vpack.c.bf16 %v1045_v17, %v1044_v14 }
 0x312   :  { %1495 = vmatprep.subr.bf16.mxu1 %v1494_v22 }
 0x313   :  { %1497 = vmatpush3.bf16.msra.mxu1 %v1494_v22 }
 0x314   :  { %1499 = vmatprep.subr.bf16.mxu1 %v1498_v23 }
 0x317   :  { %1501 = vmatpush3.bf16.msra.mxu1 %v1498_v23 }
 0x31a   :  { %1420 = vmatmul.mubr.msk.f32.vlgmr.msra.gmra.mrb[16].mxu1 %vm924_vm2, %v1047_v38 }
 0x3ed   :  { %v1421_v15 = vpop.f32.mrb[16].mxu1 }
 0x3ee   :  { %v1130_v25 = vmul.f32 %v1421_v15, %v1421_v15  ;;  %v1120_v27 = vpop.f32.mrb[17].mxu1  ;;  %v1152_v42 = vmul.f32 0.87758255, %v1421_v15  ;;  %v1293_v55 = vadd.f32 -0.23971277, %v1421_v15  ;;  %v1183_v61 = vmul.f32 %v1421_v15, %v1181_v54 }
 0x3ef   :  { %v1129_v31 = vmul.f32 %v1120_v27, %v1120_v27  ;;  %vm1158_vm10 = vcmp.gt.f32.partialorder %v1421_v15, -0.87758255  ;;  %v1151_v57 = vmul.f32 0.87758255, %v1120_v27  ;;  %v1292_v62 = vadd.f32 -0.23971277, %v1120_v27 }
 0x3f0   :  { %v1132_v28 = vsub.f32 1.0, %v1130_v25  ;;  %vm1157_vm11 = vcmp.gt.f32.partialorder %v1120_v27, -0.87758255  ;;  %v1182_v30 = vmul.f32 %v1180_v59, %v1120_v27 }
 0x3f1   :  { %v1131_v35 = vsub.f32 1.0, %v1129_v31 }
 0x3f2   :  { %v1134_v32 = vmax.f32 %v1132_v28, 0.0 }
 0x3f3   :  { %v1133_v39 = vmax.f32 %v1131_v35, 0.0 }
 0x3f4   :  { %v1136_v36 = vmin.f32 %v1134_v32, 1.0 }
 0x3f5   :  { %v1135_v21 = vmin.f32 %v1133_v39, 1.0 }
 0x3f6   :  { %1591 = vrsqrt.f32 %v1136_v36  ;;  %vm1146_vm6 = vcmp.eq.f32.partialorder %v1136_v36, inf  ;;  %v1149_v50 = vand.u32 2147483648, %v1136_v36  ;;  %vm1148_vm7 = vcmp.eq.f32.partialorder %v1136_v36, 0.0 }
 0x3f7   :  { %1593 = vrsqrt.f32 %v1135_v21  ;;  %vm1139_vm8 = vcmp.eq.f32.partialorder %v1135_v21, inf  ;;  %v1142_v46 = vand.u32 2147483648, %v1135_v21  ;;  %vm1141_vm9 = vcmp.eq.f32.partialorder %v1135_v21, 0.0 }
 0x400   :  { %v1592_v48 = vpop.eup %1591 }
 0x401   :  { %v1145_v18 = vmul.f32 %v1592_v48, %v1136_v36  ;;  %v1594_v51 = vpop.eup %1593 }
 0x402   :  { %v1138_v11 = vmul.f32 %v1594_v51, %v1135_v21 }
 0x403   :  { %v1147_v52 = vsel %vm1146_vm6, %v1136_v36, %v1145_v18 }
 0x404   :  { %v1150_v41 = vsel %vm1148_vm7, %v1149_v50, %v1147_v52  ;;  %v1140_v26 = vsel %vm1139_vm8, %v1135_v21, %v1138_v11 }
 0x405   :  { %v1154_v45 = vmul.f32 0.47942555, %v1150_v41  ;;  %v1143_v56 = vsel %vm1141_vm9, %v1142_v46, %v1140_v26 }
 0x406   :  { %v1153_v58 = vmul.f32 0.47942555, %v1143_v56 }
 0x407   :  { %v1156_v2 = vsub.f32 %v1152_v42, %v1154_v45 }
 0x408   :  { %v1155_v29 = vsub.f32 %v1151_v57, %v1153_v58 }
 0x409   :  { %v1162_v20 = vsel %vm1158_vm10, %v1156_v2, %v1293_v55 }
 0x40a   :  { %v1179_v60 = vmul.f32 %v1177_v12, %v1162_v20  ;;  %v1161_v0 = vsel %vm1157_vm11, %v1155_v29, %v1292_v62 }
 0x40b   :  { %v1178_v1 = vmul.f32 %v1176_v53, %v1161_v0 }
 0x40c   :  { %v1185_v63 = vadd.f32 %v1183_v61, %v1179_v60 }
 0x40d   :  { %v1184_v4 = vadd.f32 %v1182_v30, %v1178_v1 }
 0x40e   :  { %v1187_v3 = vmul.f32 30.0, %v1185_v63 }
 0x40f   :  { %v1186_v33 = vmul.f32 30.0, %v1184_v4 }
 0x410   :  { %1189 = vst.msk [vmem:[%s2004_s2 + $0x8] sm:$0xff] %vm1026_vm3, %v1187_v3 }
 0x411   :  { %1188 = vst.msk [vmem:[%s2004_s2] sm:$0xff] %vm1026_vm3, %v1186_v33 }

</bundles_post_ra>
